<compile_context>
chip_gen: v5e
topology: v5e:2x2
jax: 0.10.0
libtpu: 0.0.40
codegen_flags: <defaults>
</compile_context>

<pallas_src>
import jax
import jax.numpy as jnp
from jax.experimental import pallas as pl
from jax.experimental.pallas import tpu as pltpu


def _avg_pool_kernel(x_ref, o_ref, sum_acc, cnt_acc):
    """Accumulate sum + non-zero count over the seq (reduction) grid axis."""
    s = pl.program_id(2)

    @pl.when(s == 0)
    def _():
        sum_acc[...] = jnp.zeros_like(sum_acc)
        cnt_acc[...] = jnp.zeros_like(cnt_acc)

    x = x_ref[...]                                   # (TB, TS, TD) tile
    xf = x.astype(jnp.float32)                       # f32 accumulation
    # Reduce over the sublane (seq) axis: pure VPU adds, no cross-lane work.
    sum_acc[...] += jnp.sum(xf, axis=1)
    cnt_acc[...] += jnp.sum((x != 0).astype(jnp.float32), axis=1)

    @pl.when(s == pl.num_programs(2) - 1)
    def _():
        # Finalize: divide once per output tile, cast back to input dtype.
        o_ref[...] = (sum_acc[...] / (cnt_acc[...] + 1e-16)).astype(o_ref.dtype)


def _pick_tile(dim, target, align):
    """Largest `align`-multiple divisor of `dim` that is <= target, else full dim."""
    if dim <= target:
        return dim
    t = (target // align) * align
    while t >= align:
        if dim % t == 0:
            return t
        t -= align
    return dim  # fallback: full dimension is always a legal block size


def average_pooling(x, *, vmem_tile_bytes=4 * 1024 * 1024):
    """Mean-pool over seq axis with padding-aware denominator: (B,S,D) -> (B,D)."""
    B, S, D = x.shape
    itemsize = jnp.dtype(x.dtype).itemsize

    # Lane-dense embed tiles (multiples of 128) and 8-aligned seq chunks.
    TD = _pick_tile(D, 512, 128)
    TS = _pick_tile(S, 512, 8)
    # Pack batch rows per grid step up to ~vmem_tile_bytes of input per step.
    # Double-buffered by the pipeline, this stays well under the default scoped
    # VMEM budget on all generations (including v7x's smaller 64 MiB VMEM).
    max_tb = max(1, vmem_tile_bytes // max(1, TS * TD * itemsize))
    TB = _pick_tile(B, max_tb, 8)

    grid = (B // TB, D // TD, S // TS)  # seq reduction axis last

    return pl.pallas_call(
        _avg_pool_kernel,
        out_shape=jax.ShapeDtypeStruct((B, D), x.dtype),
        grid=grid,
        in_specs=[pl.BlockSpec((TB, TS, TD), lambda b, d, s: (b, s, d))],
        out_specs=pl.BlockSpec((TB, TD), lambda b, d, s: (b, d)),
        scratch_shapes=[
            pltpu.VMEM((TB, TD), jnp.float32),   # running sum accumulator
            pltpu.VMEM((TB, TD), jnp.float32),   # running non-zero count
        ],
        compiler_params=pltpu.CompilerParams(
            dimension_semantics=("parallel", "parallel", "arbitrary"),
        ),
    )(x)


if __name__ == "__main__":
    key = jax.random.PRNGKey(0)
    B, S, D = 2, 8, 32
    x = jax.random.normal(key, (B, S, D), dtype=jnp.float32)
    # Zero out trailing seq positions of one row to exercise the padding-aware
    # (non-zero count) denominator path.
    x = x.at[1, 6:, :].set(0.0)

    out = jax.block_until_ready(average_pooling(x))

    # Reference matching the PyTorch module semantics.
    ref_sum = jnp.sum(x, axis=1)
    ref_cnt = jnp.sum((x != 0).astype(jnp.float32), axis=1)
    ref = ref_sum / (ref_cnt + 1e-16)

    assert out.shape == (B, D), out.shape
    assert jnp.allclose(out, ref, atol=1e-5, rtol=1e-5), "mismatch vs reference"
    print("KERNEL_OK")
</pallas_src>

<mosaic_0001>
module attributes {stable_mosaic.version = 11 : i64} {
  func.func @_avg_pool_kernel(%arg0: i32, %arg1: i32, %arg2: i32, %arg3: memref<2x8x32xf32, #tpu.memory_space<vmem>>, %arg4: memref<2x32xf32, #tpu.memory_space<vmem>>, %arg5: memref<2x32xf32, #tpu.memory_space<vmem>>, %arg6: memref<2x32xf32, #tpu.memory_space<vmem>>) attributes {dimension_semantics = [#tpu.dimension_semantics<parallel>, #tpu.dimension_semantics<parallel>, #tpu.dimension_semantics<arbitrary>], iteration_bounds = array<i64: 1, 1, 1>, scalar_prefetch = 0 : i64, scratch_operands = 2 : i64, tpu.core_type = #tpu.core_type<tc>, window_params = [{transform_indices = @transform_0, window_bounds = array<i64: 2, 8, 32>}, {transform_indices = @transform_1, window_bounds = array<i64: 2, 32>}]} {
    %c0_i32 = arith.constant 0 : i32
    %0 = arith.cmpi eq, %arg2, %c0_i32 : i32
    %1 = arith.extui %0 : i1 to i32
    %c0_i32_0 = arith.constant 0 : i32
    %2 = arith.cmpi ne, %1, %c0_i32_0 : i32
    scf.if %2 {
      %cst_15 = arith.constant 0.000000e+00 : f32
      %19 = vector.broadcast %cst_15 : f32 to vector<2x32xf32>
      %c0_16 = arith.constant 0 : index
      %c0_17 = arith.constant 0 : index
      %20 = vector.load %arg5[%c0_16, %c0_17] : memref<2x32xf32, #tpu.memory_space<vmem>>, vector<2x32xf32>
      tpu.vector_store %arg5[%c0_16, %c0_17], %19 {strides = array<i32>} : memref<2x32xf32, #tpu.memory_space<vmem>>, vector<2x32xf32>,
      %cst_18 = arith.constant 0.000000e+00 : f32
      %21 = vector.broadcast %cst_18 : f32 to vector<2x32xf32>
      %c0_19 = arith.constant 0 : index
      %c0_20 = arith.constant 0 : index
      %22 = vector.load %arg6[%c0_19, %c0_20] : memref<2x32xf32, #tpu.memory_space<vmem>>, vector<2x32xf32>
      tpu.vector_store %arg6[%c0_19, %c0_20], %21 {strides = array<i32>} : memref<2x32xf32, #tpu.memory_space<vmem>>, vector<2x32xf32>,
    } else {
    }
    %c0 = arith.constant 0 : index
    %c0_1 = arith.constant 0 : index
    %c0_2 = arith.constant 0 : index
    %3 = vector.load %arg3[%c0, %c0_1, %c0_2] : memref<2x8x32xf32, #tpu.memory_space<vmem>>, vector<2x8x32xf32>
    %c0_3 = arith.constant 0 : index
    %c0_4 = arith.constant 0 : index
    %4 = vector.load %arg5[%c0_3, %c0_4] : memref<2x32xf32, #tpu.memory_space<vmem>>, vector<2x32xf32>
    %cst = arith.constant dense<0.000000e+00> : vector<2x32xf32>
    %5 = vector.multi_reduction <add>, %3, %cst [1] : vector<2x8x32xf32> to vector<2x32xf32>
    %6 = arith.addf %4, %5 : vector<2x32xf32>
    %c0_5 = arith.constant 0 : index
    %c0_6 = arith.constant 0 : index
    %7 = vector.load %arg5[%c0_5, %c0_6] : memref<2x32xf32, #tpu.memory_space<vmem>>, vector<2x32xf32>
    tpu.vector_store %arg5[%c0_5, %c0_6], %6 {strides = array<i32>} : memref<2x32xf32, #tpu.memory_space<vmem>>, vector<2x32xf32>,
    %c0_7 = arith.constant 0 : index
    %c0_8 = arith.constant 0 : index
    %8 = vector.load %arg6[%c0_7, %c0_8] : memref<2x32xf32, #tpu.memory_space<vmem>>, vector<2x32xf32>
    %cst_9 = arith.constant 0.000000e+00 : f32
    %9 = vector.broadcast %cst_9 : f32 to vector<2x8x32xf32>
    %10 = arith.cmpf one, %3, %9 : vector<2x8x32xf32>
    %11 = arith.extui %10 : vector<2x8x32xi1> to vector<2x8x32xi32>
    %12 = arith.sitofp %11 : vector<2x8x32xi32> to vector<2x8x32xf32>
    %cst_10 = arith.constant dense<0.000000e+00> : vector<2x32xf32>
    %13 = vector.multi_reduction <add>, %12, %cst_10 [1] : vector<2x8x32xf32> to vector<2x32xf32>
    %14 = arith.addf %8, %13 : vector<2x32xf32>
    %c0_11 = arith.constant 0 : index
    %c0_12 = arith.constant 0 : index
    %15 = vector.load %arg6[%c0_11, %c0_12] : memref<2x32xf32, #tpu.memory_space<vmem>>, vector<2x32xf32>
    tpu.vector_store %arg6[%c0_11, %c0_12], %14 {strides = array<i32>} : memref<2x32xf32, #tpu.memory_space<vmem>>, vector<2x32xf32>,
    %c0_i32_13 = arith.constant 0 : i32
    %16 = arith.cmpi eq, %arg2, %c0_i32_13 : i32
    %17 = arith.extui %16 : i1 to i32
    %c0_i32_14 = arith.constant 0 : i32
    %18 = arith.cmpi ne, %17, %c0_i32_14 : i32
    scf.if %18 {
      %c0_15 = arith.constant 0 : index
      %c0_16 = arith.constant 0 : index
      %19 = vector.load %arg5[%c0_15, %c0_16] : memref<2x32xf32, #tpu.memory_space<vmem>>, vector<2x32xf32>
      %c0_17 = arith.constant 0 : index
      %c0_18 = arith.constant 0 : index
      %20 = vector.load %arg6[%c0_17, %c0_18] : memref<2x32xf32, #tpu.memory_space<vmem>>, vector<2x32xf32>
      %cst_19 = arith.constant 1.000000e-16 : f32
      %21 = vector.broadcast %cst_19 : f32 to vector<2x32xf32>
      %22 = arith.addf %20, %21 : vector<2x32xf32>
      %23 = arith.divf %19, %22 : vector<2x32xf32>
      %c0_20 = arith.constant 0 : index
      %c0_21 = arith.constant 0 : index
      %24 = vector.load %arg4[%c0_20, %c0_21] : memref<2x32xf32, #tpu.memory_space<vmem>>, vector<2x32xf32>
      tpu.vector_store %arg4[%c0_20, %c0_21], %23 {strides = array<i32>} : memref<2x32xf32, #tpu.memory_space<vmem>>, vector<2x32xf32>,
    } else {
    }
    return
  }
  func.func @transform_0(%arg0: i32, %arg1: i32, %arg2: i32) -> (i32, i32, i32) {
    %c0_i32 = arith.constant 0 : i32
    return %arg0, %arg2, %arg1 : i32, i32, i32
  }
  func.func @transform_1(%arg0: i32, %arg1: i32, %arg2: i32) -> (i32, i32) {
    %c0_i32 = arith.constant 0 : i32
    return %arg0, %arg1 : i32, i32
  }
}

</mosaic_0001>

<bundles_post_ra>
// kernel: tpu_custom_call.1
= control target key start
LH: loop header
LB: loop body
LE: loop exit
PB: predicated region body
PF: predicated region fallthrough
CT: control target
= control target key end

     0   :  { %6 = vsyncpa [#allocation5], 0  ;;  %s211_s0 = inlined_call_operand.hbm [shape: f32[2,8,32], index: 0, kind: input, shape index: {}]   ;;  %s212_s1 = inlined_call_operand.hbm [shape: f32[2,32], index: 1, kind: output, shape index: {}]  }
   0x1   :  { %7 = vsyncpa [#allocation6], 0  ;;  %s12_s8 = sshll.u32 %s211_s0, 4  ;;  %s185_s9 = smov [#allocation4]   ;;  %s13_s8 = int_to_ptr.hbm [resolvable:$true] %s12_s8 }
   0x2   :  { %s14_s10 = sshll.u32 %s185_s9, 4  ;;  %s186_s11 = smov 128   ;;  %s15_s10 = int_to_ptr.vmem [resolvable:$true] %s14_s10 }
   0x3   :  { %s187_s12 = smov 8  }
   0x4   :  { %20 = dma.hbm_to_vmem [thread:$0]  %s13_s8, 256, %s15_s10, [#allocation5], %s186_s11, %s186_s11, %s187_s12  }
   0x5   :  { %181 = dma.done.wait [#allocation5], 256  }
   0x6   :  { %182 = vsyncadd [#allocation5], 4294967040  ;;  %vm29_vm0 = vcmask 254976   ;;  %v188_v0 = vmov 0.0   ;;  %v32_v1 = vld [vmem:[#allocation4] sm:$0xff]  ;;  %v33_v2 = vld [vmem:[#allocation4 + $0x8] sm:$0xff] }
   0x7   :  { %31 = vst.msk [vmem:[#allocation3] sm:$0x3] %vm29_vm0, %v188_v0  ;;  %vm35_vm1 = vcmask 261120   ;;  %vm59_vm2 = vcmp.ne.f32.partialorder %v32_v1, 0.0  ;;  %vm60_vm3 = vcmp.ne.f32.partialorder %v33_v2, 0.0  ;;  %vm52_vm4 = vcmask 1041409  }
   0x8   :  { %30 = vst.msk [vmem:[#allocation2] sm:$0x3] %vm29_vm0, %v188_v0  ;;  %v36_v3 = vsel %vm35_vm1, %v32_v1, 0.0  ;;  %v43_v4 = vsel %vm35_vm1, %v33_v2, 0.0  ;;  %v124_v7 = vsel %vm59_vm2, 1.0, %v188_v0  ;;  %v125_v8 = vsel %vm60_vm3, 1.0, %v188_v0 }
   0x9   :  { %v37_v5 = vrot.slane %v36_v3, 4  ;;  %v44_v6 = vrot.slane %v43_v4, 4  ;;  %v65_v9 = vsel %vm35_vm1, %v124_v7, 0.0  ;;  %v72_v10 = vsel %vm35_vm1, %v125_v8, 0.0  ;;  %s189_s0 = smov [#allocation7]   ;;  %s114_s16 = sshll.u32 %s212_s1, 4  ;;  %s115_s16 = int_to_ptr.hbm [resolvable:$true] %s114_s16 }
   0xa   :  { %v66_v13 = vrot.slane %v65_v9, 4  ;;  %v73_v14 = vrot.slane %v72_v10, 4  ;;  %s112_s13 = sshll.u32 %s189_s0, 4  ;;  %s113_s13 = int_to_ptr.vmem [resolvable:$true] %s112_s13 }
   0xb   :  { %v38_v11 = vadd.f32 %v37_v5, %v36_v3  ;;  %v45_v12 = vadd.f32 %v44_v6, %v43_v4 }
   0xc   :  { %v67_v17 = vadd.f32 %v66_v13, %v65_v9  ;;  %v74_v18 = vadd.f32 %v73_v14, %v72_v10 }
   0xd   :  { %v39_v15 = vrot.slane %v38_v11, 2  ;;  %v46_v16 = vrot.slane %v45_v12, 2 }
   0xe   :  { %v68_v21 = vrot.slane %v67_v17, 2  ;;  %v75_v22 = vrot.slane %v74_v18, 2  ;;  %v58_v32 = vld [vmem:[#allocation3] sm:$0x3] }
   0xf   :  { %v40_v19 = vadd.f32 %v39_v15, %v38_v11  ;;  %v47_v20 = vadd.f32 %v46_v16, %v45_v12  ;;  %v34_v29 = vld [vmem:[#allocation2] sm:$0x3] }
  0x10   :  { %v69_v23 = vadd.f32 %v68_v21, %v67_v17  ;;  %v76_v24 = vadd.f32 %v75_v22, %v74_v18 }
  0x11   :  { %v41_v25 = vrot.slane %v40_v19, 1  ;;  %v48_v26 = vrot.slane %v47_v20, 1 }
  0x12   :  { %v70_v27 = vrot.slane %v69_v23, 1  ;;  %v77_v28 = vrot.slane %v76_v24, 1 }
  0x13   :  { %v42_v30 = vadd.f32 %v41_v25, %v40_v19  ;;  %v49_v31 = vadd.f32 %v48_v26, %v47_v20 }
  0x14   :  { %v71_v33 = vadd.f32 %v70_v27, %v69_v23  ;;  %v78_v34 = vadd.f32 %v77_v28, %v76_v24 }
  0x15   :  { %v53_v35 = vsel %vm52_vm4, %v49_v31, %v42_v30 }
  0x16   :  { %v55_v36 = vadd.f32 %v53_v35, %v34_v29  ;;  %v81_v37 = vsel %vm52_vm4, %v78_v34, %v71_v33 }
  0x17   :  { %v83_v38 = vadd.f32 %v81_v37, %v58_v32 }
  0x18   :  { %57 = vst.msk [vmem:[#allocation2] sm:$0x3] %vm29_vm0, %v55_v36 }
  0x19   :  { %84 = vst.msk [vmem:[#allocation3] sm:$0x3] %vm29_vm0, %v83_v38 }
  0x1f   :  { %v88_v48 = vld [vmem:[#allocation2] sm:$0x3] }
  0x20   :  { %v89_v39 = vld [vmem:[#allocation3] sm:$0x3] }
  0x21   :  { %v90_v40 = vadd.f32 1e-16, %v89_v39 }
  0x23   :  { %131 = vrcp.f32 %v90_v40  ;;  %v102_v44 = vand.u32 2147483648, %v90_v40  ;;  %v100_v46 = vand.u32 2147483647, %v90_v40  ;;  %vm96_vm6 = vweird.f32 %v90_v40 }
  0x25   :  { %v103_v49 = vor.u32 1.1754944e-38, %v102_v44  ;;  %vm101_vm8 = vcmp.eq.f32.partialorder %v100_v46, 8.507059e+37 }
  0x29   :  { %v132_v41 = vpop.eup %131 }
  0x2a   :  { %v92_v42 = vmul.f32 %v132_v41, %v90_v40  ;;  %vm97_vm5 = vweird.f32 %v132_v41 }
  0x2b   :  { %vm98_vm7 = vmor %vm96_vm6, %vm97_vm5 }
  0x2c   :  { %v93_v43 = vsub.f32 1.0, %v92_v42 }
  0x2e   :  { %v94_v45 = vmul.f32 %v132_v41, %v93_v43 }
  0x30   :  { %v95_v47 = vadd.f32 %v132_v41, %v94_v45 }
  0x32   :  { %v99_v50 = vsel %vm98_vm7, %v132_v41, %v95_v47 }
  0x33   :  { %v104_v51 = vsel %vm101_vm8, %v103_v49, %v99_v50 }
  0x34   :  { %v105_v52 = vmul.f32 %v104_v51, %v88_v48 }
  0x36   :  { %106 = vst.msk [vmem:[#allocation7] sm:$0x3] %vm29_vm0, %v105_v52 }
  0x37   :  { %117 = dma.vmem_to_hbm [thread:$0]  %s113_s13, 32, %s115_s16, [#allocation6]  }
  0x38   :  { %183 = dma.done.wait [#allocation6], 32  }
  0x39   :  { %184 = vsyncadd [#allocation6], 4294967264 }
  0x3a   :  { %122 = vsyncpa [#allocation5], 1 }
  0x3b   :  { %123 = vsyncpa [#allocation6], 1 }

</bundles_post_ra>
